<compile_context>
chip_gen: v6e
topology: v6e:2x2x1
jax: 0.10.0
libtpu: 0.0.40
codegen_flags: <defaults>
</compile_context>

<pallas_src>
import jax
import jax.numpy as jnp
import numpy as np
from jax.experimental import pallas as pl
from jax.experimental.pallas import tpu as pltpu

_EPS = 1e-6


# --------------------------------------------------------------------------- #
# Kernel bodies
# --------------------------------------------------------------------------- #
def _tile_weighted_score(s_ref, dv_ref):
    """sum_b [ cos(q_b, d_b) * D_v1_b + cos(a_b, d_b) * D_v2_b ] for one tile."""
    # s_ref: [TB, 3, D] (native dtype), dv_ref: [TB, 2]
    q = s_ref[:, 0, :].astype(jnp.float32)            # [TB, D]
    a = s_ref[:, 1, :].astype(jnp.float32)            # [TB, D]
    d = s_ref[:, 2, :].astype(jnp.float32)            # [TB, D]

    # Row-wise dot products / squared norms (lane-axis reductions).
    qd = jnp.sum(q * d, axis=1, keepdims=True)        # [TB, 1]
    ad = jnp.sum(a * d, axis=1, keepdims=True)
    qq = jnp.sum(q * q, axis=1, keepdims=True)
    aa = jnp.sum(a * a, axis=1, keepdims=True)
    dd = jnp.sum(d * d, axis=1, keepdims=True)

    dn = jnp.sqrt(dd)
    # torch.nn.CosineSimilarity(dim=1, eps=1e-6): x.y / max(||x|| * ||y||, eps)
    cos1 = qd / jnp.maximum(jnp.sqrt(qq) * dn, _EPS)  # [TB, 1]
    cos2 = ad / jnp.maximum(jnp.sqrt(aa) * dn, _EPS)  # [TB, 1]

    dv = dv_ref[...].astype(jnp.float32)              # [TB, 2]
    w = cos1 * dv[:, 0:1] + cos2 * dv[:, 1:2]         # [TB, 1]
    return jnp.sum(w)                                 # scalar partial logit


def _bce_with_logits(x, z):
    # Numerically stable binary_cross_entropy_with_logits (mean over 1 element).
    return jnp.maximum(x, 0.0) - x * z + jnp.log1p(jnp.exp(-jnp.abs(x)))


def _disc_kernel_single(s_ref, dv_ref, lbl_ref, out_ref):
    # Whole batch resident in VMEM; no grid, no accumulator.
    x = _tile_weighted_score(s_ref, dv_ref)            # scalar logit
    z = lbl_ref[0, 0]                                  # scalar label from SMEM
    out_ref[...] = jnp.zeros((1, 1), jnp.float32) + _bce_with_logits(x, z)


def _disc_kernel_tiled(s_ref, dv_ref, lbl_ref, out_ref, acc_ref):
    i = pl.program_id(0)

    @pl.when(i == 0)
    def _init():
        acc_ref[...] = jnp.zeros_like(acc_ref)

    acc_ref[...] += _tile_weighted_score(s_ref, dv_ref)

    @pl.when(i == pl.num_programs(0) - 1)
    def _finalize():
        x = acc_ref[...]                               # [1, 1] logit
        z = lbl_ref[0, 0]                              # scalar label from SMEM
        out_ref[...] = _bce_with_logits(x, z)


# --------------------------------------------------------------------------- #
# Wrapper
# --------------------------------------------------------------------------- #
def _pick_batch_tile(B, D, max_tile_bytes):
    """Largest batch tile whose double-buffered (TB, 3->8 padded, D) f32 slab
    stays under max_tile_bytes.  Returns TB dividing B (or B itself)."""
    bytes_per_row = 2 * 8 * D * 4          # 2 pipeline buffers, 8 padded sublanes
    cap = max(8, max_tile_bytes // bytes_per_row)
    if B <= cap:
        return B
    tb = (min(cap, B) // 8) * 8
    while tb >= 8:
        if B % tb == 0:
            return tb
        tb -= 8
    # TODO(synk): pad/mask the tail tile instead of falling back to whole-batch
    # residency when B has no multiple-of-8 divisor <= cap.
    return B


def discriminator_forward(samples, labels, D_v1, D_v2, *,
                          max_tile_bytes=8 * 1024 * 1024):
    """samples: [B, 3, D] (any float dtype), labels: [1], D_v1/D_v2: [B]."""
    B, three, D = samples.shape
    assert three == 3

    dv = jnp.stack([D_v1, D_v2], axis=1).astype(jnp.float32)    # [B, 2] (tiny)
    lbl = jnp.asarray(labels, jnp.float32).reshape(1, 1)         # [1, 1]

    itemsize = int(np.dtype(samples.dtype).itemsize)
    cost = pl.CostEstimate(
        flops=int(10 * B * D + 10 * B),
        transcendentals=int(3 * B + 2),
        bytes_accessed=int(B * 3 * D * itemsize + B * 2 * 4 + 8),
    )

    TB = _pick_batch_tile(B, D, max_tile_bytes)
    num_tiles = B // TB

    if num_tiles == 1:
        # Grid-less: no per-grid-step bookkeeping at all.
        out = pl.pallas_call(
            _disc_kernel_single,
            out_shape=jax.ShapeDtypeStruct((1, 1), jnp.float32),
            in_specs=[
                pl.BlockSpec(memory_space=pltpu.MemorySpace.VMEM),   # samples [B,3,D]
                pl.BlockSpec(memory_space=pltpu.MemorySpace.VMEM),   # dv      [B,2]
                pl.BlockSpec(memory_space=pltpu.MemorySpace.SMEM),   # labels  [1,1]
            ],
            out_specs=pl.BlockSpec(memory_space=pltpu.MemorySpace.VMEM),
            compiler_params=pltpu.CompilerParams(
                vmem_limit_bytes=32 * 1024 * 1024),
            cost_estimate=cost,
        )(samples, dv, lbl)
    else:
        # Batch-tiled: BlockSpec pipeline overlaps HBM reads with the per-tile
        # reductions; partial logit accumulated in a (1,1) VMEM scratch.
        # TODO(synk): on v7x, emit per-tile partials on a "parallel" axis and
        # reduce across the two TensorCores instead of this serial accumulation.
        out = pl.pallas_call(
            _disc_kernel_tiled,
            out_shape=jax.ShapeDtypeStruct((1, 1), jnp.float32),
            grid=(num_tiles,),
            in_specs=[
                pl.BlockSpec((TB, 3, D), lambda i: (i, 0, 0)),       # samples slab
                pl.BlockSpec((TB, 2), lambda i: (i, 0)),             # merged D_v
                pl.BlockSpec(memory_space=pltpu.MemorySpace.SMEM),   # labels
            ],
            out_specs=pl.BlockSpec((1, 1), lambda i: (0, 0)),
            scratch_shapes=[pltpu.VMEM((1, 1), jnp.float32)],
            compiler_params=pltpu.CompilerParams(
                dimension_semantics=("arbitrary",),
                vmem_limit_bytes=32 * 1024 * 1024),
            cost_estimate=cost,
        )(samples, dv, lbl)

    return out[0, 0]


# --------------------------------------------------------------------------- #
# Pure-JAX reference + demo
# --------------------------------------------------------------------------- #
def _reference_forward(samples, labels, D_v1, D_v2):
    eps = 1e-6
    s = samples.astype(jnp.float32)
    q, a, d = s[:, 0, :], s[:, 1, :], s[:, 2, :]

    def cos(x, y):
        num = jnp.sum(x * y, axis=1)
        den = jnp.maximum(jnp.linalg.norm(x, axis=1) * jnp.linalg.norm(y, axis=1), eps)
        return num / den

    x = (jnp.dot(cos(q, d), D_v1.astype(jnp.float32))
         + jnp.dot(cos(a, d), D_v2.astype(jnp.float32)))
    z = jnp.asarray(labels, jnp.float32).reshape(())
    return jnp.maximum(x, 0.0) - x * z + jnp.log1p(jnp.exp(-jnp.abs(x)))


if __name__ == "__main__":
    # --- small single-shot path: B=8, D=128 (one tile) ---
    B, D = 8, 128
    k1, k2, k3 = jax.random.split(jax.random.PRNGKey(0), 3)
    samples = jax.random.normal(k1, (B, 3, D), dtype=jnp.float32)
    labels = jnp.array([1.0], dtype=jnp.float32)
    D_v1 = jax.random.normal(k2, (B,), dtype=jnp.float32) * 0.1
    D_v2 = jax.random.normal(k3, (B,), dtype=jnp.float32) * 0.1

    loss = jax.block_until_ready(discriminator_forward(samples, labels, D_v1, D_v2))
    ref = _reference_forward(samples, labels, D_v1, D_v2)
    assert np.allclose(np.asarray(loss), np.asarray(ref), rtol=1e-4, atol=1e-5), (loss, ref)

    # --- batch-tiled accumulator path: B=32 forced into 4 tiles of 8 rows ---
    B2 = 32
    k4, k5, k6 = jax.random.split(jax.random.PRNGKey(1), 3)
    samples2 = jax.random.normal(k4, (B2, 3, D), dtype=jnp.float32)
    labels2 = jnp.array([0.0], dtype=jnp.float32)
    D2_v1 = jax.random.normal(k5, (B2,), dtype=jnp.float32) * 0.1
    D2_v2 = jax.random.normal(k6, (B2,), dtype=jnp.float32) * 0.1

    loss2 = jax.block_until_ready(
        discriminator_forward(samples2, labels2, D2_v1, D2_v2,
                              max_tile_bytes=64 * 1024))
    ref2 = _reference_forward(samples2, labels2, D2_v1, D2_v2)
    assert np.allclose(np.asarray(loss2), np.asarray(ref2), rtol=1e-4, atol=1e-5), (loss2, ref2)

    print("KERNEL_OK")
</pallas_src>

<mosaic_0001>
module attributes {stable_mosaic.version = 11 : i64} {
  func.func @_disc_kernel_single(%arg0: memref<8x3x128xf32, #tpu.memory_space<vmem>>, %arg1: memref<8x2xf32, #tpu.memory_space<vmem>>, %arg2: memref<1x1xf32, #tpu.memory_space<smem>>, %arg3: memref<1x1xf32, #tpu.memory_space<vmem>>) attributes {dimension_semantics = [], scalar_prefetch = 0 : i64, scratch_operands = 0 : i64, tpu.core_type = #tpu.core_type<tc>} {
    %c0 = arith.constant 0 : index
    %c0_0 = arith.constant 0 : index
    %c0_1 = arith.constant 0 : index
    %0 = vector.load %arg0[%c0, %c0_0, %c0_1] : memref<8x3x128xf32, #tpu.memory_space<vmem>>, vector<8x1x128xf32>
    %1 = vector.shape_cast %0 : vector<8x1x128xf32> to vector<8x128xf32>
    %c0_2 = arith.constant 0 : index
    %c1 = arith.constant 1 : index
    %c0_3 = arith.constant 0 : index
    %2 = vector.load %arg0[%c0_2, %c1, %c0_3] : memref<8x3x128xf32, #tpu.memory_space<vmem>>, vector<8x1x128xf32>
    %3 = vector.shape_cast %2 : vector<8x1x128xf32> to vector<8x128xf32>
    %c0_4 = arith.constant 0 : index
    %c2 = arith.constant 2 : index
    %c0_5 = arith.constant 0 : index
    %4 = vector.load %arg0[%c0_4, %c2, %c0_5] : memref<8x3x128xf32, #tpu.memory_space<vmem>>, vector<8x1x128xf32>
    %5 = vector.shape_cast %4 : vector<8x1x128xf32> to vector<8x128xf32>
    %6 = arith.mulf %1, %5 : vector<8x128xf32>
    %cst = arith.constant dense<0.000000e+00> : vector<8xf32>
    %7 = vector.multi_reduction <add>, %6, %cst [1] : vector<8x128xf32> to vector<8xf32>
    %8 = vector.shape_cast %7 : vector<8xf32> to vector<8x1xf32>
    %9 = arith.mulf %3, %5 : vector<8x128xf32>
    %cst_6 = arith.constant dense<0.000000e+00> : vector<8xf32>
    %10 = vector.multi_reduction <add>, %9, %cst_6 [1] : vector<8x128xf32> to vector<8xf32>
    %11 = vector.shape_cast %10 : vector<8xf32> to vector<8x1xf32>
    %12 = arith.mulf %1, %1 : vector<8x128xf32>
    %cst_7 = arith.constant dense<0.000000e+00> : vector<8xf32>
    %13 = vector.multi_reduction <add>, %12, %cst_7 [1] : vector<8x128xf32> to vector<8xf32>
    %14 = vector.shape_cast %13 : vector<8xf32> to vector<8x1xf32>
    %15 = arith.mulf %3, %3 : vector<8x128xf32>
    %cst_8 = arith.constant dense<0.000000e+00> : vector<8xf32>
    %16 = vector.multi_reduction <add>, %15, %cst_8 [1] : vector<8x128xf32> to vector<8xf32>
    %17 = vector.shape_cast %16 : vector<8xf32> to vector<8x1xf32>
    %18 = arith.mulf %5, %5 : vector<8x128xf32>
    %cst_9 = arith.constant dense<0.000000e+00> : vector<8xf32>
    %19 = vector.multi_reduction <add>, %18, %cst_9 [1] : vector<8x128xf32> to vector<8xf32>
    %20 = vector.shape_cast %19 : vector<8xf32> to vector<8x1xf32>
    %21 = math.sqrt %20 : vector<8x1xf32>
    %22 = math.sqrt %14 : vector<8x1xf32>
    %23 = arith.mulf %22, %21 : vector<8x1xf32>
    %cst_10 = arith.constant 9.99999997E-7 : f32
    %24 = vector.broadcast %cst_10 : f32 to vector<8x1xf32>
    %25 = arith.maximumf %23, %24 : vector<8x1xf32>
    %26 = arith.divf %8, %25 : vector<8x1xf32>
    %27 = math.sqrt %17 : vector<8x1xf32>
    %28 = arith.mulf %27, %21 : vector<8x1xf32>
    %cst_11 = arith.constant 9.99999997E-7 : f32
    %29 = vector.broadcast %cst_11 : f32 to vector<8x1xf32>
    %30 = arith.maximumf %28, %29 : vector<8x1xf32>
    %31 = arith.divf %11, %30 : vector<8x1xf32>
    %c0_12 = arith.constant 0 : index
    %c0_13 = arith.constant 0 : index
    %32 = vector.load %arg1[%c0_12, %c0_13] : memref<8x2xf32, #tpu.memory_space<vmem>>, vector<8x2xf32>
    %33 = vector.extract_strided_slice %32 {offsets = [0, 0], sizes = [8, 1], strides = [1, 1]} : vector<8x2xf32> to vector<8x1xf32>
    %34 = arith.mulf %26, %33 : vector<8x1xf32>
    %35 = vector.extract_strided_slice %32 {offsets = [0, 1], sizes = [8, 1], strides = [1, 1]} : vector<8x2xf32> to vector<8x1xf32>
    %36 = arith.mulf %31, %35 : vector<8x1xf32>
    %37 = arith.addf %34, %36 : vector<8x1xf32>
    %38 = vector.shape_cast %37 : vector<8x1xf32> to vector<1x8x1xf32>
    %cst_14 = arith.constant dense<0.000000e+00> : vector<1xf32>
    %39 = vector.multi_reduction <add>, %38, %cst_14 [1, 2] : vector<1x8x1xf32> to vector<1xf32>
    %40 = vector.shape_cast %39 : vector<1xf32> to vector<1x1x1xf32>
    %41 = vector.extract %40[0, 0, 0] : f32 from vector<1x1x1xf32>
    %c0_15 = arith.constant 0 : index
    %c0_16 = arith.constant 0 : index
    %42 = memref.load %arg2[%c0_15, %c0_16] : memref<1x1xf32, #tpu.memory_space<smem>>
    %cst_17 = arith.constant 0.000000e+00 : f32
    %43 = vector.broadcast %cst_17 : f32 to vector<1x1xf32>
    %cst_18 = arith.constant 0.000000e+00 : f32
    %44 = arith.maximumf %41, %cst_18 : f32
    %45 = arith.mulf %41, %42 : f32
    %46 = arith.subf %44, %45 : f32
    %47 = math.absf %41 : f32
    %cst_19 = arith.constant 0.000000e+00 : f32
    %48 = arith.subf %cst_19, %47 : f32
    %49 = math.exp %48 : f32
    %50 = math.log1p %49 : f32
    %51 = arith.addf %46, %50 : f32
    %52 = vector.broadcast %51 : f32 to vector<1x1xf32>
    %53 = arith.addf %43, %52 : vector<1x1xf32>
    %c0_20 = arith.constant 0 : index
    %c0_21 = arith.constant 0 : index
    %54 = vector.load %arg3[%c0_20, %c0_21] : memref<1x1xf32, #tpu.memory_space<vmem>>, vector<1x1xf32>
    tpu.vector_store %arg3[%c0_20, %c0_21], %53 {strides = array<i32>} : memref<1x1xf32, #tpu.memory_space<vmem>>, vector<1x1xf32>,
    return
  }
}

</mosaic_0001>

<bundles_post_ra>
// kernel: tpu_custom_call.1
= control target key start
LH: loop header
LB: loop body
LE: loop exit
PB: predicated region body
PF: predicated region fallthrough
CT: control target
= control target key end

     0   :  { %vm57_vm0 = vcmask 1041409   ;;  %vm60_vm1 = vcmask 1042434   ;;  %vm63_vm2 = vcmask 1043459   ;;  %vm66_vm3 = vcmask 1044484   ;;  %s532_s0 = inlined_call_operand.vmem [shape: f32[8,3,128], index: 0, kind: input, shape index: {}]   ;;  %s533_s1 = inlined_call_operand.vmem [shape: f32[8,2], index: 1, kind: input, shape index: {}]   ;;  %s534_s2 = inlined_call_operand.<no memory space> [shape: f32[1,1], index: 2, kind: input, shape index: {}]   ;;  %s535_s3 = inlined_call_operand.hbm [shape: f32[1,1], index: 3, kind: output, shape index: {}]  }
   0x1   :  { %v24_v0 = vld [vmem:[%s532_s0 + $0x1] sm:$0x1]  ;;  %v25_v1 = vld [vmem:[%s532_s0 + $0x5] sm:$0x1]  ;;  %v26_v2 = vld [vmem:[%s532_s0 + $0x9] sm:$0x1] }
   0x2   :  { %v27_v3 = vld [vmem:[%s532_s0 + $0xd] sm:$0x1]  ;;  %v28_v4 = vld [vmem:[%s532_s0 + $0x11] sm:$0x1]  ;;  %v29_v5 = vld [vmem:[%s532_s0 + $0x15] sm:$0x1]  ;;  %v146_v6 = vmul.f32 %v24_v0, %v24_v0  ;;  %v147_v7 = vmul.f32 %v25_v1, %v25_v1  ;;  %v148_v8 = vmul.f32 %v26_v2, %v26_v2 }
   0x3   :  { %v30_v9 = vld [vmem:[%s532_s0 + $0x19] sm:$0x1]  ;;  %v31_v10 = vld [vmem:[%s532_s0 + $0x1d] sm:$0x1]  ;;  %v149_v11 = vmul.f32 %v27_v3, %v27_v3  ;;  %v150_v12 = vmul.f32 %v28_v4, %v28_v4  ;;  %vm69_vm4 = vcmask 1045509   ;;  %vm72_vm5 = vcmask 1046534  }
   0x4   :  { %v395_v13 = vld [vmem:[%s532_s0 + $0x2] sm:$0x1]  ;;  %vm75_vm6 = vcmask 1047559   ;;  %v151_v14 = vmul.f32 %v29_v5, %v29_v5  ;;  %v152_v15 = vmul.f32 %v30_v9, %v30_v9  ;;  %v153_v16 = vmul.f32 %v31_v10, %v31_v10  ;;  %v400_v17 = vld [vmem:[%s532_s0 + $0x6] sm:$0x1] }
   0x5   :  { %v405_v18 = vld [vmem:[%s532_s0 + $0xa] sm:$0x1]  ;;  %v162_v19 = vrot.slane %v147_v7, 7  ;;  %v164_v20 = vrot.slane %v148_v8, 6  ;;  %v166_v21 = vrot.slane %v149_v11, 5  ;;  %v168_v22 = vrot.slane %v150_v12, 4 }
   0x6   :  { %v410_v23 = vld [vmem:[%s532_s0 + $0xe] sm:$0x1]  ;;  %v170_v24 = vrot.slane %v151_v14, 3  ;;  %v172_v25 = vrot.slane %v152_v15, 2  ;;  %v174_v26 = vrot.slane %v153_v16, 1  ;;  %v80_v28 = vmul.f32 %v395_v13, %v24_v0 }
   0x7   :  { %v415_v27 = vld [vmem:[%s532_s0 + $0x12] sm:$0x1]  ;;  %v163_v29 = vsel %vm57_vm0, %v162_v19, %v146_v6  ;;  %v422_v30 = vld [vmem:[%s532_s0 + $0x16] sm:$0x1]  ;;  %v427_v31 = vld [vmem:[%s532_s0 + $0x1a] sm:$0x1]  ;;  %v81_v33 = vmul.f32 %v400_v17, %v25_v1  ;;  %v82_v34 = vmul.f32 %v405_v18, %v26_v2  ;;  %v83_v35 = vmul.f32 %v410_v23, %v27_v3 }
   0x8   :  { %v432_v32 = vld [vmem:[%s532_s0 + $0x1e] sm:$0x1]  ;;  %v165_v36 = vsel %vm60_vm1, %v164_v20, %v163_v29  ;;  %v84_v37 = vmul.f32 %v415_v27, %v28_v4  ;;  %v85_v38 = vmul.f32 %v422_v30, %v29_v5  ;;  %v86_v39 = vmul.f32 %v427_v31, %v30_v9 }
   0x9   :  { %v167_v40 = vsel %vm63_vm2, %v166_v21, %v165_v36  ;;  %v87_v41 = vmul.f32 %v432_v32, %v31_v10  ;;  %v96_v42 = vrot.slane %v81_v33, 7  ;;  %v98_v43 = vrot.slane %v82_v34, 6 }
   0xa   :  { %v169_v44 = vsel %vm66_vm3, %v168_v22, %v167_v40  ;;  %v100_v45 = vrot.slane %v83_v35, 5  ;;  %v102_v46 = vrot.slane %v84_v37, 4  ;;  %v104_v47 = vrot.slane %v85_v38, 3 }
   0xb   :  { %v171_v48 = vsel %vm69_vm4, %v170_v24, %v169_v44  ;;  %v97_v49 = vsel %vm57_vm0, %v96_v42, %v80_v28  ;;  %v106_v50 = vrot.slane %v86_v39, 2  ;;  %v108_v51 = vrot.slane %v87_v41, 1 }
   0xc   :  { %v173_v52 = vsel %vm72_vm5, %v172_v25, %v171_v48  ;;  %v99_v53 = vsel %vm60_vm1, %v98_v43, %v97_v49  ;;  %v179_v54 = vmul.f32 %v395_v13, %v395_v13  ;;  %v180_v55 = vmul.f32 %v400_v17, %v400_v17 }
   0xd   :  { %9 = vsyncpa [#allocation4], 0  ;;  %v175_v56 = vsel %vm75_vm6, %v174_v26, %v173_v52  ;;  %v101_v57 = vsel %vm63_vm2, %v100_v45, %v99_v53  ;;  %v181_v58 = vmul.f32 %v405_v18, %v405_v18  ;;  %v182_v59 = vmul.f32 %v410_v23, %v410_v23  ;;  %v16_v0 = vld [vmem:[%s532_s0] sm:$0x1]  ;;  %v17_v1 = vld [vmem:[%s532_s0 + $0x4] sm:$0x1] }
   0xe   :  { %177 = vadd.xlane.f32.xlu0 %v175_v56  ;;  %v103_v60 = vsel %vm66_vm3, %v102_v46, %v101_v57  ;;  %v183_v61 = vmul.f32 %v415_v27, %v415_v27  ;;  %v184_v62 = vmul.f32 %v422_v30, %v422_v30  ;;  %v185_v63 = vmul.f32 %v427_v31, %v427_v31  ;;  %v18_v2 = vld [vmem:[%s532_s0 + $0x8] sm:$0x1]  ;;  %v19_v7 = vld [vmem:[%s532_s0 + $0xc] sm:$0x1]  ;;  %v20_v8 = vld [vmem:[%s532_s0 + $0x10] sm:$0x1] }
   0xf   :  { %v105_v3 = vsel %vm69_vm4, %v104_v47, %v103_v60  ;;  %v186_v4 = vmul.f32 %v432_v32, %v432_v32  ;;  %v195_v5 = vrot.slane %v180_v55, 7  ;;  %v197_v6 = vrot.slane %v181_v58, 6  ;;  %v21_v14 = vld [vmem:[%s532_s0 + $0x14] sm:$0x1]  ;;  %v22_v21 = vld [vmem:[%s532_s0 + $0x18] sm:$0x1] }
  0x10   :  { %v107_v9 = vsel %vm72_vm5, %v106_v50, %v105_v3  ;;  %v199_v10 = vrot.slane %v182_v59, 5  ;;  %v201_v11 = vrot.slane %v183_v61, 4  ;;  %v203_v12 = vrot.slane %v184_v62, 3  ;;  %v23_v22 = vld [vmem:[%s532_s0 + $0x1c] sm:$0x1]  ;;  %s345_s7 = smov 127  }
  0x11   :  { %v109_v15 = vsel %vm75_vm6, %v108_v51, %v107_v9  ;;  %v196_v16 = vsel %vm57_vm0, %v195_v5, %v179_v54  ;;  %v205_v19 = vrot.slane %v185_v63, 2  ;;  %v207_v20 = vrot.slane %v186_v4, 1  ;;  %s346_s14 = smov 0.0   ;;  %s347_s17 = smov [#allocation3]  }
  0x12   :  { %111 = vadd.xlane.f32.xlu1 %v109_v15  ;;  %v198_v24 = vsel %vm60_vm1, %v197_v6, %v196_v16  ;;  %v113_v25 = vmul.f32 %v16_v0, %v16_v0  ;;  %v114_v26 = vmul.f32 %v17_v1, %v17_v1  ;;  %v115_v28 = vmul.f32 %v18_v2, %v18_v2  ;;  %s292_s18 = sshll.u32 %s347_s17, 4  ;;  %s293_s18 = int_to_ptr.vmem [resolvable:$true] %s292_s18 }
  0x13   :  { %v200_v29 = vsel %vm63_vm2, %v199_v10, %v198_v24  ;;  %v116_v33 = vmul.f32 %v19_v7, %v19_v7  ;;  %v117_v34 = vmul.f32 %v20_v8, %v20_v8  ;;  %v118_v35 = vmul.f32 %v21_v14, %v21_v14  ;;  %s323_s21 = scalar_lea.vmem %s293_s18, 16  ;;  %s327_s22 = scalar_lea.vmem %s293_s18, 32 }
  0x14   :  { %v202_v36 = vsel %vm66_vm3, %v201_v11, %v200_v29  ;;  %v119_v37 = vmul.f32 %v22_v21, %v22_v21  ;;  %v120_v38 = vmul.f32 %v23_v22, %v23_v22  ;;  %v129_v39 = vrot.slane %v114_v26, 7  ;;  %p324_p0 = scmp.ne.s32.totalorder %s293_s18, %s323_s21  ;;  %p328_p1 = scmp.lt.s32.totalorder %s293_s18, %s293_s18 }
  0x15   :  { %v204_v40 = vsel %vm69_vm4, %v203_v12, %v202_v36  ;;  %v131_v41 = vrot.slane %v115_v28, 6  ;;  %v133_v42 = vrot.slane %v116_v33, 5  ;;  %v135_v43 = vrot.slane %v117_v34, 4  ;;  %p329_p2 = scmp.lt.s32.totalorder %s327_s22, %s323_s21 }
  0x16   :  { %v206_v44 = vsel %vm72_vm5, %v205_v19, %v204_v40  ;;  %v130_v45 = vsel %vm57_vm0, %v129_v39, %v113_v25  ;;  %v137_v46 = vrot.slane %v118_v35, 3  ;;  %v139_v47 = vrot.slane %v119_v37, 2 }
  0x17   :  { %v208_v48 = vsel %vm75_vm6, %v207_v20, %v206_v44  ;;  %v132_v49 = vsel %vm60_vm1, %v131_v41, %v130_v45  ;;  %v141_v50 = vrot.slane %v120_v38, 1  ;;  %v40_v51 = vmul.f32 %v395_v13, %v16_v0  ;;  %v241_v38 = vld [vmem:[%s533_s1] sm:$0xff]  ;;  %p330_p3 = por %p329_p2, %p328_p1 }
  0x18   :  { %210 = vadd.xlane.f32.xlu0 %v208_v48  ;;  %v134_v52 = vsel %vm63_vm2, %v133_v42, %v132_v49  ;;  %v41_v53 = vmul.f32 %v400_v17, %v17_v1  ;;  %v42_v54 = vmul.f32 %v405_v18, %v18_v2  ;;  %v43_v55 = vmul.f32 %v410_v23, %v19_v7 }
  0x19   :  { %v136_v56 = vsel %vm66_vm3, %v135_v43, %v134_v52  ;;  %v44_v57 = vmul.f32 %v415_v27, %v20_v8  ;;  %v45_v58 = vmul.f32 %v422_v30, %v21_v14  ;;  %v46_v59 = vmul.f32 %v427_v31, %v22_v21  ;;  %p331_p4 = pnand %p330_p3, %p324_p0 }
  0x1a   :  { %v138_v60 = vsel %vm69_vm4, %v137_v46, %v136_v56  ;;  %v47_v13 = vmul.f32 %v432_v32, %v23_v22  ;;  %v56_v61 = vrot.slane %v41_v53, 7  ;;  %v59_v62 = vrot.slane %v42_v54, 6 }
  0x1b   :  { %v140_v17 = vsel %vm72_vm5, %v139_v47, %v138_v60  ;;  %v62_v63 = vrot.slane %v43_v55, 5  ;;  %v65_v18 = vrot.slane %v44_v57, 4  ;;  %v68_v1 = vrot.slane %v45_v58, 3 }
  0x1c   :  { %v142_v23 = vsel %vm75_vm6, %v141_v50, %v140_v17  ;;  %v58_v0 = vsel %vm57_vm0, %v56_v61, %v40_v51  ;;  %v71_v30 = vrot.slane %v46_v59, 2  ;;  %v74_v2 = vrot.slane %v47_v13, 1 }
  0x1d   :  { %144 = vadd.xlane.f32.xlu1 %v142_v23  ;;  %v61_v27 = vsel %vm60_vm1, %v59_v62, %v58_v0  ;;  %vm249_vm13 = vcmask 7168   ;;  %vm284_vm15 = vcmask 0  }
  0x1e   :  { %v64_v31 = vsel %vm63_vm2, %v62_v63, %v61_v27 }
  0x1f   :  { %v67_v32 = vsel %vm66_vm3, %v65_v18, %v64_v31 }
  0x20   :  { %v70_v3 = vsel %vm69_vm4, %v68_v1, %v67_v32 }
  0x21   :  { %v73_v4 = vsel %vm72_vm5, %v71_v30, %v70_v3 }
  0x22   :  { %v76_v5 = vsel %vm75_vm6, %v74_v2, %v73_v4 }
  0x23   :  { %78 = vadd.xlane.f32.xlu0 %v76_v5 }
  0x97   :  { %v178_v6 = vpop.xlane.xlu0 %177 }
  0x98   :  { %309 = vrsqrt.f32 %v178_v6  ;;  %vm232_vm7 = vcmp.eq.f32.partialorder %v178_v6, inf  ;;  %v235_v16 = vand.u32 2147483648, %v178_v6  ;;  %vm234_vm9 = vcmp.eq.f32.partialorder %v178_v6, 0.0 }
  0x9b   :  { %v112_v7 = vpop.xlane.xlu1 %111 }
  0xa1   :  { %v211_v8 = vpop.xlane.xlu0 %210 }
  0xa2   :  { %311 = vrsqrt.f32 %v211_v8  ;;  %vm214_vm8 = vcmp.eq.f32.partialorder %v211_v8, inf  ;;  %v217_v19 = vand.u32 2147483648, %v211_v8  ;;  %vm216_vm10 = vcmp.eq.f32.partialorder %v211_v8, 0.0 }
  0xa5   :  { %v310_v10 = vpop.eup %309 }
  0xa6   :  { %v145_v9 = vpop.xlane.xlu1 %144  ;;  %v231_v11 = vmul.f32 %v310_v10, %v178_v6 }
  0xa7   :  { %313 = vrsqrt.f32 %v145_v9  ;;  %vm221_vm11 = vcmp.eq.f32.partialorder %v145_v9, inf  ;;  %v224_v26 = vand.u32 2147483648, %v145_v9  ;;  %vm223_vm12 = vcmp.eq.f32.partialorder %v145_v9, 0.0 }
  0xa8   :  { %v233_v14 = vsel %vm232_vm7, %v178_v6, %v231_v11 }
  0xa9   :  { %v236_v21 = vsel %vm234_vm9, %v235_v16, %v233_v14 }
  0xac   :  { %v79_v40 = vpop.xlane.xlu0 %78 }
  0xaf   :  { %v312_v12 = vpop.eup %311 }
  0xb0   :  { %v213_v15 = vmul.f32 %v312_v12, %v211_v8 }
  0xb2   :  { %v215_v20 = vsel %vm214_vm8, %v211_v8, %v213_v15 }
  0xb3   :  { %v218_v22 = vsel %vm216_vm10, %v217_v19, %v215_v20 }
  0xb4   :  { %v314_v24 = vpop.eup %313  ;;  %v237_v25 = vmul.f32 %v236_v21, %v218_v22 }
  0xb5   :  { %v220_v28 = vmul.f32 %v314_v24, %v145_v9 }
  0xb6   :  { %v238_v29 = vmax.f32 %v237_v25, 1e-06 }
  0xb7   :  { %v222_v33 = vsel %vm221_vm11, %v145_v9, %v220_v28 }
  0xb8   :  { %315 = vrcp.f32 %v238_v29  ;;  %v225_v34 = vsel %vm223_vm12, %v224_v26, %v222_v33 }
  0xb9   :  { %v226_v35 = vmul.f32 %v225_v34, %v218_v22 }
  0xbb   :  { %v227_v36 = vmax.f32 %v226_v35, 1e-06 }
  0xbd   :  { %317 = vrcp.f32 %v227_v36 }
  0xc5   :  { %v316_v37 = vpop.eup %315 }
  0xc6   :  { %v240_v39 = vmul.f32 %v316_v37, %v112_v7 }
  0xc8   :  { %v243_v41 = vmul.f32 %v241_v38, %v240_v39 }
  0xca   :  { %v318_v42 = vpop.eup %317  ;;  %245 = vrot.lane.b32.xlu1 %v243_v41, %s345_s7 }
  0xcb   :  { %v229_v43 = vmul.f32 %v318_v42, %v79_v40 }
  0xcd   :  { %v242_v44 = vmul.f32 %v241_v38, %v229_v43 }
 0x13c   :  { %v246_v45 = vpop.permute.xlu1 %245 }
 0x13d   :  { %v248_v46 = vadd.f32 %v246_v45, %v242_v44 }
 0x13f   :  { %v250_v47 = vsel %vm249_vm13, %v248_v46, 0.0 }
 0x140   :  { %251 = vadd.xlane.f32.xlu0 %v250_v47 }
 0x1c9   :  { %v252_v48 = vpop.xlane.xlu0 %251 }
 0x1ca   :  { %v253_v49 = vrot.slane %v252_v48, 4 }
 0x1cc   :  { %v254_v50 = vadd.f32 %v253_v49, %v252_v48 }
 0x1ce   :  { %v255_v51 = vrot.slane %v254_v50, 2 }
 0x1d0   :  { %v256_v52 = vadd.f32 %v255_v51, %v254_v50 }
 0x1d2   :  { %v257_v53 = vrot.slane %v256_v52, 1 }
 0x1d4   :  { %v258_v54 = vadd.f32 %v257_v53, %v256_v52 }
 0x1d6   :  { %300 = vpush %v258_v54 }
 0x207   :  { %s301_s1 = spop %300 }
 0x208   :  { %s264_s8 = sand.u32 2147483647, %s301_s1  ;;  %s262_s13 = smul.f32 %s301_s1, %s534_s2 }
 0x209   :  { %s265_s9 = ssub.f32 0.0, %s264_s8  ;;  %s261_s15 = smax.f32 %s346_s14, %s301_s1 }
 0x20a   :  { %s263_s16 = ssub.f32 %s261_s15, %s262_s13 }
 0x20b   :  { %v266_v55 = vstv %s265_s9 }
 0x20c   :  { %v267_v56 = vmul.f32 1.442695, %v266_v55 }
 0x20e   :  { %319 = vpow2.f32 %v267_v56 }
 0x21b   :  { %v320_v57 = vpop.eup %319 }
 0x21c   :  { %302 = vpush %v320_v57 }
 0x24d   :  { %s303_s10 = spop %302 }
 0x24e   :  { %v270_v58 = vstv %s303_s10 }
 0x24f   :  { %v271_v59 = vadd.f32 1.0, %v270_v58  ;;  %v274_v60 = vmul.f32 -0.5, %v270_v58  ;;  %v277_v61 = vand.u32 2147483647, %v270_v58 }
 0x251   :  { %321 = vlog2.f32 %v271_v59  ;;  %v275_v13 = vadd.f32 1.0, %v274_v60  ;;  %vm278_vm14 = vcmp.lt.f32.partialorder %v277_v61, 0.0004427343 }
 0x253   :  { %v276_v17 = vmul.f32 %v275_v13, %v270_v58 }
 0x25e   :  { %v322_v62 = vpop.eup %321 }
 0x25f   :  { %v273_v63 = vmul.f32 0.6931472, %v322_v62 }
 0x261   :  { %v279_v18 = vsel %vm278_vm14, %v276_v17, %v273_v63 }
 0x262   :  { %304 = vpush %v279_v18 }
 0x293   :  { %s305_s19 = spop %304 }
 0x294   :  { %s281_s20 = sadd.f32 %s305_s19, %s263_s16 }
 0x296   :  { %v282_v23 = vstv %s281_s20 }
 0x297   :  { %285 = vst.msk [vmem:[#allocation3] sm:$0x1] %vm284_vm15, %v282_v23 }
 0x298   :  { %334 = shalt.err (!%p331_p4)
}
 0x299   :  { %295 = dma.vmem_to_hbm [thread:$0]  %s293_s18, 16, %s535_s3, [#allocation4]  }
 0x29a   :  { %343 = dma.done.wait [#allocation4], 16  }
 0x29b   :  { %344 = vsyncadd [#allocation4], 4294967280 }
 0x29c   :  { %299 = vsyncpa [#allocation4], 1 }

</bundles_post_ra>
